<compile_context>
chip_gen: v7x
topology: tpu7x:2x2x1
jax: 0.10.0
libtpu: 0.0.40
codegen_flags: <defaults>
</compile_context>

<pallas_src>
import functools

import jax
import jax.numpy as jnp
from jax.experimental import pallas as pl
from jax.experimental.pallas import tpu as pltpu


def _round_up(a, b):
    return (a + b - 1) // b * b


# --------------------------------------------------------------------------
# Phase 1: per-row normalization + softmax attention (O(n*d + n*C) work).
# --------------------------------------------------------------------------
def _prologue_kernel(x_ref, lab_ref, embd_ref, xn_ref, sq_ref, att_ref, *,
                     num_classes, n_valid, bm):
    x = x_ref[...]                      # (bm, d)  float32
    lab = lab_ref[...]                  # (bm, 1)  int32 (-1 for padded rows)
    embd = embd_ref[...]                # (d, Cpad) float32

    # F.normalize(x, p=2, dim=1, eps=1e-12)
    rnorm = jnp.sqrt(jnp.sum(x * x, axis=1, keepdims=True))
    xn = x / jnp.maximum(rnorm, 1e-12)
    xn_ref[...] = xn
    sq_ref[...] = jnp.sum(xn * xn, axis=1, keepdims=True)       # (bm, 1)

    # F.normalize(embd, p=2, dim=0, eps=1e-12)  (padded columns stay zero)
    cnorm = jnp.sqrt(jnp.sum(embd * embd, axis=0, keepdims=True))
    en = embd / jnp.maximum(cnorm, 1e-12)

    logits = jnp.dot(xn, en, preferred_element_type=jnp.float32)  # (bm, Cpad)
    cls = jax.lax.broadcasted_iota(jnp.int32, logits.shape, 1)
    den = jnp.where(cls < num_classes, jnp.exp(logits), 0.0)      # mask padded classes
    num = jnp.sum(jnp.where(cls == lab, den, 0.0), axis=1, keepdims=True)
    att = num / jnp.sum(den, axis=1, keepdims=True)               # (bm, 1)

    # Zero attention on padded rows so padded pairs contribute nothing later.
    row0 = pl.program_id(0) * bm
    ridx = jax.lax.broadcasted_iota(jnp.int32, (bm, 1), 0) + row0
    att_ref[...] = jnp.where(ridx < n_valid, att, 0.0)


# --------------------------------------------------------------------------
# Phase 2: tiled n x n pairwise plane with four scalar accumulators.
# --------------------------------------------------------------------------
def _pairwise_kernel(xr_ref, xc_ref, sqr_ref, sqc_ref, labr_ref, labc_ref,
                     attr_ref, attc_ref, out_ref,
                     acc_wp_d2, acc_wp, acc_wn_s2, acc_wn, *,
                     alpha, l, inv_sigma2, bm, bn, use_bf16_matmul):
    i = pl.program_id(0)
    j = pl.program_id(1)

    @pl.when((i == 0) & (j == 0))
    def _init():
        acc_wp_d2[...] = jnp.zeros_like(acc_wp_d2)
        acc_wp[...] = jnp.zeros_like(acc_wp)
        acc_wn_s2[...] = jnp.zeros_like(acc_wn_s2)
        acc_wn[...] = jnp.zeros_like(acc_wn)

    xr = xr_ref[...]                    # (bm, d)
    xc = xc_ref[...]                    # (bn, d)
    if use_bf16_matmul:                 # optional MXU speedup on v6e/v7x
        xr = xr.astype(jnp.bfloat16)
        xc = xc.astype(jnp.bfloat16)
    # Gram block xr @ xc^T without materializing a transpose.
    g = jax.lax.dot_general(xr, xc, (((1,), (1,)), ((), ())),
                            preferred_element_type=jnp.float32)   # (bm, bn)

    d2 = jnp.maximum(sqr_ref[...] + sqc_ref[...] - 2.0 * g, 1e-12)
    dist = jnp.sqrt(d2)
    s_pos = jnp.exp(-d2 * inv_sigma2)
    s_neg = jnp.maximum(alpha - dist, 1e-12)

    same = labr_ref[...] == labc_ref[...]                    # (bm, bn) bool
    a_min = jnp.minimum(attr_ref[...], attc_ref[...])        # (bm, bn)
    w = jnp.where(same, s_pos, s_neg) * a_min                 # fused S * A

    # Off-diagonal predicate only matters for the positive branch; negative
    # pairs never sit on the true diagonal (same label with itself).
    rg = jax.lax.broadcasted_iota(jnp.int32, (bm, 1), 0) + i * bm
    cg = jax.lax.broadcasted_iota(jnp.int32, (1, bn), 1) + j * bn
    offdiag = rg != cg

    wp = jnp.where(same & offdiag, w, 0.0)                    # W * p_mask * (1-I)
    wn = jnp.where(same, 0.0, w)                              # W * n_mask

    acc_wp_d2[...] += jnp.sum(wp * d2)
    acc_wp[...] += jnp.sum(wp)
    acc_wn_s2[...] += jnp.sum(wn * s_neg * s_neg)
    acc_wn[...] += jnp.sum(wn)

    @pl.when((i == pl.num_programs(0) - 1) & (j == pl.num_programs(1) - 1))
    def _finalize():
        # 1e-30 guard only protects the degenerate 0/0 case (no positive or no
        # negative pairs); it is bit-exact otherwise.
        l_p = 0.5 * acc_wp_d2[...] / jnp.maximum(acc_wp[...], 1e-30)
        l_n = 0.5 * acc_wn_s2[...] / jnp.maximum(acc_wn[...], 1e-30)
        out_ref[...] = (1.0 - l) * l_p + l * l_n


# --------------------------------------------------------------------------
# Wrapper
# --------------------------------------------------------------------------
def osm_caa_loss(x, labels, embd, alpha=1.2, l=0.5, osm_sigma=0.8,
                 block=256, use_bf16_matmul=False):
    x = x.astype(jnp.float32)
    embd = embd.astype(jnp.float32)
    n, d = x.shape
    num_classes = embd.shape[1]

    # Tile size: multiple of 128 lanes (so (1, blk) column-form blocks are
    # lane-dense), capped so small batches do not over-pad.
    blk = min(block, _round_up(n, 128))
    blk = _round_up(blk, 128)
    n_pad = _round_up(n, blk)
    c_pad = _round_up(num_classes, 128)

    # Pad inputs; padded rows get label -1 (never matches a real class).
    xp = jnp.zeros((n_pad, d), jnp.float32).at[:n].set(x)
    ep = jnp.zeros((d, c_pad), jnp.float32).at[:, :num_classes].set(embd)
    lab_row = jnp.full((n_pad, 1), -1, jnp.int32).at[:n, 0].set(
        labels.astype(jnp.int32))

    nb = n_pad // blk

    # ---- Phase 1: row normalization + attention ----
    xn, sq_row, atten_row = pl.pallas_call(
        functools.partial(_prologue_kernel, num_classes=num_classes,
                          n_valid=n, bm=blk),
        out_shape=(jax.ShapeDtypeStruct((n_pad, d), jnp.float32),
                   jax.ShapeDtypeStruct((n_pad, 1), jnp.float32),
                   jax.ShapeDtypeStruct((n_pad, 1), jnp.float32)),
        grid=(nb,),
        in_specs=[
            pl.BlockSpec((blk, d), lambda i: (i, 0)),
            pl.BlockSpec((blk, 1), lambda i: (i, 0)),
            pl.BlockSpec((d, c_pad), lambda i: (0, 0)),
        ],
        out_specs=(
            pl.BlockSpec((blk, d), lambda i: (i, 0)),
            pl.BlockSpec((blk, 1), lambda i: (i, 0)),
            pl.BlockSpec((blk, 1), lambda i: (i, 0)),
        ),
        compiler_params=pltpu.CompilerParams(
            dimension_semantics=("parallel",),
            vmem_limit_bytes=32 * 1024 * 1024),
    )(xp, lab_row, ep)

    # Column-form vectors produced once in plain JAX (cheap O(n) relayout),
    # so the hot tile loop never transposes anything.
    sq_col = sq_row.reshape(1, n_pad)
    atten_col = atten_row.reshape(1, n_pad)
    lab_col = lab_row.reshape(1, n_pad)

    cost = pl.CostEstimate(
        flops=int(2 * n_pad * n_pad * d + 12 * n_pad * n_pad),
        transcendentals=int(2 * n_pad * n_pad),
        bytes_accessed=int(4 * (2 * n_pad * d + 6 * n_pad + 1)),
    )

    # ---- Phase 2: tiled pairwise plane with scalar accumulators ----
    # TODO(synk): for v7x megacore, split one grid axis "parallel" with
    # per-core partial accumulators + a tiny epilogue reduction.
    out = pl.pallas_call(
        functools.partial(_pairwise_kernel, alpha=float(alpha), l=float(l),
                          inv_sigma2=1.0 / (float(osm_sigma) ** 2),
                          bm=blk, bn=blk, use_bf16_matmul=use_bf16_matmul),
        out_shape=jax.ShapeDtypeStruct((1, 1), jnp.float32),
        grid=(nb, nb),
        in_specs=[
            pl.BlockSpec((blk, d), lambda i, j: (i, 0)),   # xn row tile
            pl.BlockSpec((blk, d), lambda i, j: (j, 0)),   # xn col tile
            pl.BlockSpec((blk, 1), lambda i, j: (i, 0)),   # sq   (row form)
            pl.BlockSpec((1, blk), lambda i, j: (0, j)),   # sq   (col form)
            pl.BlockSpec((blk, 1), lambda i, j: (i, 0)),   # labels (row)
            pl.BlockSpec((1, blk), lambda i, j: (0, j)),   # labels (col)
            pl.BlockSpec((blk, 1), lambda i, j: (i, 0)),   # atten (row)
            pl.BlockSpec((1, blk), lambda i, j: (0, j)),   # atten (col)
        ],
        out_specs=pl.BlockSpec((1, 1), lambda i, j: (0, 0)),
        scratch_shapes=[pltpu.VMEM((1, 1), jnp.float32)] * 4,
        compiler_params=pltpu.CompilerParams(
            dimension_semantics=("arbitrary", "arbitrary"),
            vmem_limit_bytes=32 * 1024 * 1024),
        cost_estimate=cost,
    )(xn, xn, sq_row, sq_col, lab_row, lab_col, atten_row, atten_col)

    return out[0, 0]


# --------------------------------------------------------------------------
# Pure-JAX reference mirroring the PyTorch forward exactly (for validation).
# --------------------------------------------------------------------------
def osm_caa_loss_ref(x, labels, embd, alpha=1.2, l=0.5, osm_sigma=0.8):
    n = x.shape[0]
    xn = x / jnp.maximum(jnp.linalg.norm(x, axis=1, keepdims=True), 1e-12)
    sq = jnp.sum(xn * xn, axis=1, keepdims=True)
    d2 = jnp.maximum(sq + sq.T - 2.0 * xn @ xn.T, 1e-12)
    dist = jnp.sqrt(d2)
    S = jnp.exp(-d2 / (osm_sigma * osm_sigma))
    S_neg = jnp.maximum(alpha - dist, 1e-12)
    p_mask = (labels[:, None] == labels[None, :]).astype(jnp.float32)
    n_mask = 1.0 - p_mask
    S = S * p_mask + S_neg * n_mask
    en = embd / jnp.maximum(jnp.linalg.norm(embd, axis=0, keepdims=True), 1e-12)
    den = jnp.exp(xn @ en)
    atten = den[jnp.arange(n), labels] / jnp.sum(den, axis=1)
    A = jnp.minimum(atten[:, None], atten[None, :])
    W = S * A
    off = 1.0 - jnp.eye(n, dtype=jnp.float32)
    W_P = W * p_mask * off
    W_N = W * n_mask * off
    L_P = 0.5 * jnp.sum(W_P * d2) / jnp.sum(W_P)
    L_N = 0.5 * jnp.sum(W_N * S_neg * S_neg) / jnp.sum(W_N)
    return (1.0 - l) * L_P + l * L_N


if __name__ == "__main__":
    key = jax.random.PRNGKey(0)
    kx, ke = jax.random.split(key)

    n, d, C = 8, 32, 8
    x = jax.random.normal(kx, (n, d), dtype=jnp.float32)
    embd = jax.random.normal(ke, (d, C), dtype=jnp.float32)  # FC weights (d x C)
    labels = jnp.array([0, 1, 2, 3, 0, 1, 2, 3], dtype=jnp.int32)

    loss = osm_caa_loss(x, labels, embd)
    loss = jax.block_until_ready(loss)

    ref = osm_caa_loss_ref(x, labels, embd)
    assert jnp.allclose(loss, ref, rtol=1e-5, atol=1e-6), (loss, ref)
    print("KERNEL_OK")
</pallas_src>

<mosaic_0001>
module attributes {stable_mosaic.version = 11 : i64} {
  func.func @_prologue_kernel(%arg0: i32, %arg1: memref<128x32xf32, #tpu.memory_space<vmem>>, %arg2: memref<128x1xi32, #tpu.memory_space<vmem>>, %arg3: memref<32x128xf32, #tpu.memory_space<vmem>>, %arg4: memref<128x32xf32, #tpu.memory_space<vmem>>, %arg5: memref<128x1xf32, #tpu.memory_space<vmem>>, %arg6: memref<128x1xf32, #tpu.memory_space<vmem>>) attributes {dimension_semantics = [#tpu.dimension_semantics<parallel>], iteration_bounds = array<i64: 1>, scalar_prefetch = 0 : i64, scratch_operands = 0 : i64, tpu.core_type = #tpu.core_type<tc>, window_params = [{transform_indices = @transform_0, window_bounds = array<i64: 128, 32>}, {transform_indices = @transform_1, window_bounds = array<i64: 128, 1>}, {pipeline_mode = #tpu.pipeline_mode<synchronous>, transform_indices = @transform_2, window_bounds = array<i64: 32, 128>}, {transform_indices = @transform_3, window_bounds = array<i64: 128, 32>}, {transform_indices = @transform_4, window_bounds = array<i64: 128, 1>}, {transform_indices = @transform_5, window_bounds = array<i64: 128, 1>}]} {
    %c0 = arith.constant 0 : index
    %c0_0 = arith.constant 0 : index
    %0 = vector.load %arg1[%c0, %c0_0] : memref<128x32xf32, #tpu.memory_space<vmem>>, vector<128x32xf32>
    %c0_1 = arith.constant 0 : index
    %c0_2 = arith.constant 0 : index
    %1 = vector.load %arg2[%c0_1, %c0_2] : memref<128x1xi32, #tpu.memory_space<vmem>>, vector<128x1xi32>
    %c0_3 = arith.constant 0 : index
    %c0_4 = arith.constant 0 : index
    %2 = vector.load %arg3[%c0_3, %c0_4] : memref<32x128xf32, #tpu.memory_space<vmem>>, vector<32x128xf32>
    %3 = arith.mulf %0, %0 : vector<128x32xf32>
    %cst = arith.constant dense<0.000000e+00> : vector<128xf32>
    %4 = vector.multi_reduction <add>, %3, %cst [1] : vector<128x32xf32> to vector<128xf32>
    %5 = vector.shape_cast %4 : vector<128xf32> to vector<128x1xf32>
    %6 = math.sqrt %5 : vector<128x1xf32>
    %cst_5 = arith.constant 9.99999996E-13 : f32
    %7 = vector.broadcast %cst_5 : f32 to vector<128x1xf32>
    %8 = arith.maximumf %6, %7 : vector<128x1xf32>
    %9 = vector.broadcast %8 : vector<128x1xf32> to vector<128x32xf32>
    %10 = arith.divf %0, %9 : vector<128x32xf32>
    %c0_6 = arith.constant 0 : index
    %c0_7 = arith.constant 0 : index
    %11 = vector.load %arg4[%c0_6, %c0_7] : memref<128x32xf32, #tpu.memory_space<vmem>>, vector<128x32xf32>
    tpu.vector_store %arg4[%c0_6, %c0_7], %10 {strides = array<i32>} : memref<128x32xf32, #tpu.memory_space<vmem>>, vector<128x32xf32>,
    %12 = arith.mulf %10, %10 : vector<128x32xf32>
    %cst_8 = arith.constant dense<0.000000e+00> : vector<128xf32>
    %13 = vector.multi_reduction <add>, %12, %cst_8 [1] : vector<128x32xf32> to vector<128xf32>
    %14 = vector.shape_cast %13 : vector<128xf32> to vector<128x1xf32>
    %c0_9 = arith.constant 0 : index
    %c0_10 = arith.constant 0 : index
    %15 = vector.load %arg5[%c0_9, %c0_10] : memref<128x1xf32, #tpu.memory_space<vmem>>, vector<128x1xf32>
    tpu.vector_store %arg5[%c0_9, %c0_10], %14 {strides = array<i32>} : memref<128x1xf32, #tpu.memory_space<vmem>>, vector<128x1xf32>,
    %16 = arith.mulf %2, %2 : vector<32x128xf32>
    %cst_11 = arith.constant dense<0.000000e+00> : vector<128xf32>
    %17 = vector.multi_reduction <add>, %16, %cst_11 [0] : vector<32x128xf32> to vector<128xf32>
    %18 = vector.shape_cast %17 : vector<128xf32> to vector<1x128xf32>
    %19 = math.sqrt %18 : vector<1x128xf32>
    %cst_12 = arith.constant 9.99999996E-13 : f32
    %20 = vector.broadcast %cst_12 : f32 to vector<1x128xf32>
    %21 = arith.maximumf %19, %20 : vector<1x128xf32>
    %22 = vector.broadcast %21 : vector<1x128xf32> to vector<32x128xf32>
    %23 = arith.divf %2, %22 : vector<32x128xf32>
    %cst_13 = arith.constant dense<0.000000e+00> : vector<128x128xf32>
    %24 = tpu.matmul %10, %23, %cst_13 {dimension_numbers = #tpu.dot_dimension_numbers<[1], [0], [0], [1], [0, 0, 1, 1], [], []>} : vector<128x32xf32>, vector<32x128xf32>, vector<128x128xf32> -> vector<128x128xf32>
    %25 = tpu.iota {dimensions = array<i32: 1>} : vector<128x128xi32>
    %c8_i32 = arith.constant 8 : i32
    %26 = vector.broadcast %c8_i32 : i32 to vector<128x128xi32>
    %27 = arith.cmpi slt, %25, %26 : vector<128x128xi32>
    %28 = math.exp %24 : vector<128x128xf32>
    %cst_14 = arith.constant 0.000000e+00 : f32
    %29 = vector.broadcast %cst_14 : f32 to vector<128x128xf32>
    %30 = arith.select %27, %28, %29 : vector<128x128xi1>, vector<128x128xf32>
    %31 = vector.broadcast %1 : vector<128x1xi32> to vector<128x128xi32>
    %32 = arith.cmpi eq, %25, %31 : vector<128x128xi32>
    %cst_15 = arith.constant 0.000000e+00 : f32
    %33 = vector.broadcast %cst_15 : f32 to vector<128x128xf32>
    %34 = arith.select %32, %30, %33 : vector<128x128xi1>, vector<128x128xf32>
    %cst_16 = arith.constant dense<0.000000e+00> : vector<128xf32>
    %35 = vector.multi_reduction <add>, %34, %cst_16 [1] : vector<128x128xf32> to vector<128xf32>
    %36 = vector.shape_cast %35 : vector<128xf32> to vector<128x1xf32>
    %cst_17 = arith.constant dense<0.000000e+00> : vector<128xf32>
    %37 = vector.multi_reduction <add>, %30, %cst_17 [1] : vector<128x128xf32> to vector<128xf32>
    %38 = vector.shape_cast %37 : vector<128xf32> to vector<128x1xf32>
    %39 = arith.divf %36, %38 : vector<128x1xf32>
    %c128_i32 = arith.constant 128 : i32
    %40 = arith.muli %arg0, %c128_i32 : i32
    %41 = tpu.iota {dimensions = array<i32: 0>} : vector<128x1xi32>
    %42 = vector.broadcast %40 : i32 to vector<128x1xi32>
    %43 = arith.addi %41, %42 : vector<128x1xi32>
    %c8_i32_18 = arith.constant 8 : i32
    %44 = vector.broadcast %c8_i32_18 : i32 to vector<128x1xi32>
    %45 = arith.cmpi slt, %43, %44 : vector<128x1xi32>
    %cst_19 = arith.constant 0.000000e+00 : f32
    %46 = vector.broadcast %cst_19 : f32 to vector<128x1xf32>
    %47 = arith.select %45, %39, %46 : vector<128x1xi1>, vector<128x1xf32>
    %c0_20 = arith.constant 0 : index
    %c0_21 = arith.constant 0 : index
    %48 = vector.load %arg6[%c0_20, %c0_21] : memref<128x1xf32, #tpu.memory_space<vmem>>, vector<128x1xf32>
    tpu.vector_store %arg6[%c0_20, %c0_21], %47 {strides = array<i32>} : memref<128x1xf32, #tpu.memory_space<vmem>>, vector<128x1xf32>,
    return
  }
  func.func @transform_0(%arg0: i32) -> (i32, i32) {
    %c0_i32 = arith.constant 0 : i32
    %c0_i32_0 = arith.constant 0 : i32
    return %arg0, %c0_i32 : i32, i32
  }
  func.func @transform_1(%arg0: i32) -> (i32, i32) {
    %c0_i32 = arith.constant 0 : i32
    %c0_i32_0 = arith.constant 0 : i32
    return %arg0, %c0_i32 : i32, i32
  }
  func.func @transform_2(%arg0: i32) -> (i32, i32) {
    %c0_i32 = arith.constant 0 : i32
    %c0_i32_0 = arith.constant 0 : i32
    %c0_i32_1 = arith.constant 0 : i32
    return %c0_i32, %c0_i32_0 : i32, i32
  }
  func.func @transform_3(%arg0: i32) -> (i32, i32) {
    %c0_i32 = arith.constant 0 : i32
    %c0_i32_0 = arith.constant 0 : i32
    return %arg0, %c0_i32 : i32, i32
  }
  func.func @transform_4(%arg0: i32) -> (i32, i32) {
    %c0_i32 = arith.constant 0 : i32
    %c0_i32_0 = arith.constant 0 : i32
    return %arg0, %c0_i32 : i32, i32
  }
  func.func @transform_5(%arg0: i32) -> (i32, i32) {
    %c0_i32 = arith.constant 0 : i32
    %c0_i32_0 = arith.constant 0 : i32
    return %arg0, %c0_i32 : i32, i32
  }
}

</mosaic_0001>

<bundles_post_ra>
// kernel: tpu_custom_call.1
= control target key start
LH: loop header
LB: loop body
LE: loop exit
PB: predicated region body
PF: predicated region fallthrough
CT: control target
= control target key end

     0   :  { %vm69_vm0 = vcmask 261120   ;;  %s1676_s0 = inlined_call_operand.vmem [shape: f32[128,32], index: 0, kind: input, shape index: {}]   ;;  %s1677_s2 = inlined_call_operand.vmem [shape: f32[32,128], index: 2, kind: input, shape index: {}]   ;;  %s1678_s1 = inlined_call_operand.vmem [shape: s32[128,1], index: 1, kind: input, shape index: {}]   ;;  %s1679_s3 = inlined_call_operand.vmem [shape: f32[128,32], index: 3, kind: output, shape index: {0}]   ;;  %s1680_s4 = inlined_call_operand.vmem [shape: f32[128,1], index: 4, kind: output, shape index: {1}]   ;;  %s1681_s5 = inlined_call_operand.vmem [shape: f32[128,1], index: 5, kind: output, shape index: {2}]  }
   0x1   :  { %v1106_v0 = vld [vmem:[%s1676_s0] sm:$0xff]  ;;  %v1111_v1 = vld [vmem:[%s1676_s0 + $0x8] sm:$0xff]  ;;  %v1120_v4 = vld [vmem:[%s1676_s0 + $0x10] sm:$0xff] }
   0x2   :  { %v53_v2 = vmul.f32 %v1106_v0, %v1106_v0  ;;  %v54_v3 = vmul.f32 %v1111_v1, %v1111_v1  ;;  %v1125_v5 = vld [vmem:[%s1676_s0 + $0x40] sm:$0xff]  ;;  %v1131_v7 = vld [vmem:[%s1676_s0 + $0x48] sm:$0xff]  ;;  %v55_v10 = vmul.f32 %v1120_v4, %v1120_v4  ;;  %v1148_v11 = vld [vmem:[%s1677_s2 + $0x10] sm:$0xff] }
   0x3   :  { %v1136_v8 = vld [vmem:[%s1677_s2] sm:$0xff]  ;;  %v1141_v9 = vld [vmem:[%s1677_s2 + $0x8] sm:$0xff]  ;;  %v61_v13 = vmul.f32 %v1125_v5, %v1125_v5  ;;  %v62_v14 = vmul.f32 %v1131_v7, %v1131_v7  ;;  %v1158_v15 = vld [vmem:[%s1677_s2 + $0x18] sm:$0xff]  ;;  %v377_v19 = vmul.f32 %v1148_v11, %v1148_v11 }
   0x4   :  { %v70_v6 = vsel %vm69_vm0, %v53_v2, 0.0  ;;  %v73_v12 = vsel %vm69_vm0, %v54_v3, 0.0  ;;  %v375_v16 = vmul.f32 %v1136_v8, %v1136_v8  ;;  %v1165_v17 = vld [vmem:[%s1676_s0 + $0x18] sm:$0xff]  ;;  %v376_v18 = vmul.f32 %v1141_v9, %v1141_v9  ;;  %v1181_v26 = vld [vmem:[%s1676_s0 + $0x20] sm:$0xff]  ;;  %v1189_v31 = vld [vmem:[%s1676_s0 + $0x28] sm:$0xff] }
   0x5   :  { %71 = vadd.xlane.f32.xlu0 %v70_v6  ;;  %v94_v20 = vsel %vm69_vm0, %v61_v13, 0.0  ;;  %v378_v21 = vmul.f32 %v1158_v15, %v1158_v15  ;;  %v76_v23 = vsel %vm69_vm0, %v55_v10, 0.0  ;;  %v56_v24 = vmul.f32 %v1165_v17, %v1165_v17  ;;  %v1194_v33 = vld [vmem:[%s1676_s0 + $0x50] sm:$0xff]  ;;  %v1210_v41 = vld [vmem:[%s1676_s0 + $0x58] sm:$0xff]  ;;  %v1226_v49 = vld [vmem:[%s1676_s0 + $0x60] sm:$0xff] }
   0x6   :  { %95 = vadd.xlane.f32.xlu1 %v94_v20  ;;  %v379_v22 = vadd.f32 %v376_v18, %v375_v16  ;;  %v97_v25 = vsel %vm69_vm0, %v62_v14, 0.0  ;;  %v57_v30 = vmul.f32 %v1181_v26, %v1181_v26  ;;  %v63_v34 = vmul.f32 %v1194_v33, %v1194_v33  ;;  %v1204_v38 = vld [vmem:[%s1676_s0 + $0x30] sm:$0xff]  ;;  %v1220_v46 = vld [vmem:[%s1676_s0 + $0x38] sm:$0xff]  ;;  %v1237_v55 = vld [vmem:[%s1676_s0 + $0x68] sm:$0xff] }
   0x7   :  { %v79_v29 = vsel %vm69_vm0, %v56_v24, 0.0  ;;  %v58_v37 = vmul.f32 %v1189_v31, %v1189_v31  ;;  %v64_v42 = vmul.f32 %v1210_v41, %v1210_v41  ;;  %v59_v45 = vmul.f32 %v1204_v38, %v1204_v38  ;;  %v1246_v59 = vld [vmem:[%s1676_s0 + $0x70] sm:$0xff]  ;;  %v1254_v62 = vld [vmem:[%s1676_s0 + $0x78] sm:$0xff] }
   0x8   :  { %v380_v27 = vadd.f32 %v379_v22, %v377_v19  ;;  %v82_v36 = vsel %vm69_vm0, %v57_v30, 0.0  ;;  %v100_v39 = vsel %vm69_vm0, %v63_v34, 0.0  ;;  %v65_v50 = vmul.f32 %v1226_v49, %v1226_v49 }
   0x9   :  { %74 = vadd.xlane.f32.xlu0 %v73_v12  ;;  %v85_v44 = vsel %vm69_vm0, %v58_v37, 0.0  ;;  %v103_v47 = vsel %vm69_vm0, %v64_v42, 0.0  ;;  %v88_v52 = vsel %vm69_vm0, %v59_v45, 0.0  ;;  %v60_v53 = vmul.f32 %v1220_v46, %v1220_v46 }
   0xa   :  { %98 = vadd.xlane.f32.xlu1 %v97_v25  ;;  %v381_v28 = vadd.f32 %v380_v27, %v378_v21  ;;  %v106_v54 = vsel %vm69_vm0, %v65_v50, 0.0  ;;  %v66_v56 = vmul.f32 %v1237_v55, %v1237_v55  ;;  %v67_v60 = vmul.f32 %v1246_v59, %v1246_v59 }
   0xb   :  { %v91_v57 = vsel %vm69_vm0, %v60_v53, 0.0  ;;  %v68_v2 = vmul.f32 %v1254_v62, %v1254_v62  ;;  %v1071_v24 = vmov 0  }
   0xc   :  { %v382_v32 = vrot.slane %v381_v28, 4  ;;  %v109_v58 = vsel %vm69_vm0, %v66_v56, 0.0  ;;  %v112_v61 = vsel %vm69_vm0, %v67_v60, 0.0  ;;  %998 = vset.pattern.permute.xlu0 %v1071_v24 }
   0xd   :  { %77 = vadd.xlane.f32.xlu0 %v76_v23  ;;  %v115_v10 = vsel %vm69_vm0, %v68_v2, 0.0 }
   0xe   :  { %v383_v35 = vadd.f32 %v382_v32, %v381_v28  ;;  %101 = vadd.xlane.f32.xlu1 %v100_v39 }
  0x10   :  { %v384_v40 = vrot.slane %v383_v35, 2 }
  0x11   :  { %80 = vadd.xlane.f32.xlu0 %v79_v29 }
  0x12   :  { %v385_v43 = vadd.f32 %v384_v40, %v383_v35  ;;  %104 = vadd.xlane.f32.xlu1 %v103_v47 }
  0x14   :  { %v386_v48 = vrot.slane %v385_v43, 1 }
  0x15   :  { %83 = vadd.xlane.f32.xlu0 %v82_v36 }
  0x16   :  { %v387_v51 = vadd.f32 %v386_v48, %v385_v43  ;;  %107 = vadd.xlane.f32.xlu1 %v106_v54 }
  0x18   :  { %999 = vrsqrt.f32 %v387_v51  ;;  %vm390_vm1 = vcmp.eq.f32.partialorder %v387_v51, inf  ;;  %v393_v3 = vand.u32 2147483648, %v387_v51  ;;  %vm392_vm2 = vcmp.eq.f32.partialorder %v387_v51, 0.0 }
  0x19   :  { %86 = vadd.xlane.f32.xlu0 %v85_v44 }
  0x1a   :  { %110 = vadd.xlane.f32.xlu1 %v109_v58 }
  0x1d   :  { %89 = vadd.xlane.f32.xlu0 %v88_v52 }
  0x1e   :  { %113 = vadd.xlane.f32.xlu1 %v112_v61 }
  0x21   :  { %92 = vadd.xlane.f32.xlu0 %v91_v57 }
  0x22   :  { %v1000_v63 = vpop.eup %999  ;;  %116 = vadd.xlane.f32.xlu1 %v115_v10 }
  0x23   :  { %v389_v6 = vmul.f32 %v1000_v63, %v387_v51 }
  0x25   :  { %v391_v12 = vsel %vm390_vm1, %v387_v51, %v389_v6 }
  0x26   :  { %v394_v13 = vsel %vm392_vm2, %v393_v3, %v391_v12 }
  0x27   :  { %v395_v14 = vmax.f32 %v394_v13, 1e-12 }
  0x29   :  { %1001 = vrcp.f32 %v395_v14 }
  0x33   :  { %v1002_v16 = vpop.eup %1001 }
  0x34   :  { %v397_v18 = vmul.f32 %v1002_v16, %v1136_v8  ;;  %v398_v19 = vmul.f32 %v1002_v16, %v1141_v9  ;;  %v399_v20 = vmul.f32 %v1002_v16, %v1148_v11  ;;  %v400_v21 = vmul.f32 %v1002_v16, %v1158_v15  ;;  %v33_v8 = vld [vmem:[%s1678_s1] sm:$0xff] }
  0x36   :  { %v984_v22 = vpack.c.bf16 %v398_v19, %v397_v18  ;;  %v988_v23 = vpack.c.bf16 %v400_v21, %v399_v20 }
  0x37   :  { %646 = vperm.xlu0 %998, %v33_v8  }
  0x38   :  { %985 = vmatprep.subr.bf16.mxu0 %v984_v22  ;;  %992 = vmatprep.subr.bf16.mxu1 %v984_v22 }
  0x39   :  { %987 = vmatpush3.bf16.msra.mxu0 %v984_v22  ;;  %994 = vmatpush3.bf16.msra.mxu1 %v984_v22 }
  0x3a   :  { %989 = vmatprep.subr.bf16.mxu0 %v988_v23  ;;  %993 = vmatprep.subr.bf16.mxu1 %v988_v23 }
  0x3d   :  { %991 = vmatpush3.bf16.msra.mxu0 %v988_v23  ;;  %995 = vmatpush3.bf16.msra.mxu1 %v988_v23 }
  0x92   :  { %v72_v9 = vpop.xlane.xlu0 %71 }
  0x93   :  { %1003 = vrsqrt.f32 %v72_v9  ;;  %v96_v15 = vpop.xlane.xlu1 %95  ;;  %vm120_vm3 = vcmp.eq.f32.partialorder %v72_v9, inf  ;;  %vm122_vm4 = vcmp.eq.f32.partialorder %v72_v9, 0.0  ;;  %v123_v32 = vand.u32 2147483648, %v72_v9 }
  0x94   :  { %vm176_vm7 = vcmp.eq.f32.partialorder %v96_v15, inf  ;;  %vm178_vm9 = vcmp.eq.f32.partialorder %v96_v15, 0.0  ;;  %v179_v39 = vand.u32 2147483648, %v96_v15 }
  0x96   :  { %v75_v11 = vpop.xlane.xlu0 %74 }
  0x97   :  { %1005 = vrsqrt.f32 %v75_v11  ;;  %v1266_v27 = vpop.xlane.xlu1 %98  ;;  %vm127_vm5 = vcmp.eq.f32.partialorder %v75_v11, inf  ;;  %vm129_vm6 = vcmp.eq.f32.partialorder %v75_v11, 0.0  ;;  %v130_v35 = vand.u32 2147483648, %v75_v11 }
  0x98   :  { %1007 = vrsqrt.f32 %v96_v15  ;;  %vm183_vm11 = vcmp.eq.f32.partialorder %v1266_v27, inf  ;;  %vm185_vm12 = vcmp.eq.f32.partialorder %v1266_v27, 0.0  ;;  %v186_v51 = vand.u32 2147483648, %v1266_v27 }
  0x9a   :  { %v78_v25 = vpop.xlane.xlu0 %77 }
  0x9b   :  { %1009 = vrsqrt.f32 %v78_v25  ;;  %vm134_vm8 = vcmp.eq.f32.partialorder %v78_v25, inf  ;;  %v1272_v40 = vpop.xlane.xlu1 %101  ;;  %vm136_vm10 = vcmp.eq.f32.partialorder %v78_v25, 0.0  ;;  %v137_v47 = vand.u32 2147483648, %v78_v25 }
  0x9c   :  { %1011 = vrsqrt.f32 %v1266_v27  ;;  %vm190_vm2 = vcmp.eq.f32.partialorder %v1272_v40, inf  ;;  %v193_v22 = vand.u32 2147483648, %v1272_v40 }
  0x9d   :  { %v1004_v28 = vpop.eup %1003 }
  0x9e   :  { %v119_v29 = vmul.f32 %v1004_v28, %v72_v9  ;;  %v1269_v30 = vpop.xlane.xlu0 %80 }
  0x9f   :  { %1013 = vrsqrt.f32 %v1269_v30  ;;  %vm141_vm13 = vcmp.eq.f32.partialorder %v1269_v30, inf  ;;  %vm143_vm14 = vcmp.eq.f32.partialorder %v1269_v30, 0.0  ;;  %v144_v54 = vand.u32 2147483648, %v1269_v30  ;;  %v1286_v56 = vpop.xlane.xlu1 %104 }
  0xa0   :  { %v121_v34 = vsel %vm120_vm3, %v72_v9, %v119_v29  ;;  %1015 = vrsqrt.f32 %v1272_v40  ;;  %vm192_vm3 = vcmp.eq.f32.partialorder %v1272_v40, 0.0 }
  0xa1   :  { %v1006_v36 = vpop.eup %1005  ;;  %v124_v37 = vsel %vm122_vm4, %v123_v32, %v121_v34 }
  0xa2   :  { %v1008_v42 = vpop.eup %1007  ;;  %v230_v43 = vmax.f32 %v124_v37, 1e-12  ;;  %v126_v44 = vmul.f32 %v1006_v36, %v75_v11  ;;  %v1274_v45 = vpop.xlane.xlu0 %83 }
  0xa3   :  { %1017 = vrsqrt.f32 %v1274_v45  ;;  %v175_v50 = vmul.f32 %v1008_v42, %v96_v15  ;;  %vm148_vm15 = vcmp.eq.f32.partialorder %v1274_v45, inf  ;;  %vm150_vm1 = vcmp.eq.f32.partialorder %v1274_v45, 0.0  ;;  %v1302_v16 = vpop.xlane.xlu1 %107 }
  0xa4   :  { %1019 = vrcp.f32 %v230_v43  ;;  %v128_v48 = vsel %vm127_vm5, %v75_v11, %v126_v44  ;;  %v151_v13 = vand.u32 2147483648, %v1274_v45 }
  0xa5   :  { %v1010_v52 = vpop.eup %1009  ;;  %v131_v53 = vsel %vm129_vm6, %v130_v35, %v128_v48  ;;  %v177_v63 = vsel %vm176_vm7, %v96_v15, %v175_v50  ;;  %1021 = vrsqrt.f32 %v1286_v56  ;;  %vm197_vm6 = vcmp.eq.f32.partialorder %v1286_v56, inf }
  0xa6   :  { %v1012_v57 = vpop.eup %1011  ;;  %v231_v58 = vmax.f32 %v131_v53, 1e-12  ;;  %v133_v60 = vmul.f32 %v1010_v52, %v78_v25  ;;  %v1288_v61 = vpop.xlane.xlu0 %86  ;;  %v180_v3 = vsel %vm178_vm9, %v179_v39, %v177_v63  ;;  %vm199_vm7 = vcmp.eq.f32.partialorder %v1286_v56, 0.0 }
  0xa7   :  { %1023 = vrsqrt.f32 %v1288_v61  ;;  %v182_v6 = vmul.f32 %v1012_v57, %v1266_v27  ;;  %v238_v14 = vmax.f32 %v180_v3, 1e-12  ;;  %vm155_vm4 = vcmp.eq.f32.partialorder %v1288_v61, inf  ;;  %v1324_v29 = vpop.xlane.xlu1 %110 }
  0xa8   :  { %1025 = vrcp.f32 %v231_v58  ;;  %v135_v2 = vsel %vm134_vm8, %v78_v25, %v133_v60  ;;  %vm157_vm5 = vcmp.eq.f32.partialorder %v1288_v61, 0.0  ;;  %v158_v23 = vand.u32 2147483648, %v1288_v61 }
  0xa9   :  { %v1014_v10 = vpop.eup %1013  ;;  %v138_v12 = vsel %vm136_vm10, %v137_v47, %v135_v2  ;;  %v184_v21 = vsel %vm183_vm11, %v1266_v27, %v182_v6  ;;  %vm204_vm10 = vcmp.eq.f32.partialorder %v1302_v16, inf  ;;  %vm206_vm11 = vcmp.eq.f32.partialorder %v1302_v16, 0.0 }
  0xaa   :  { %v232_v18 = vmax.f32 %v138_v12, 1e-12  ;;  %v140_v19 = vmul.f32 %v1014_v10, %v1269_v30  ;;  %v1305_v20 = vpop.xlane.xlu0 %89  ;;  %v1016_v24 = vpop.eup %1015  ;;  %v187_v9 = vsel %vm185_vm12, %v186_v51, %v184_v21 }
  0xab   :  { %1027 = vrsqrt.f32 %v1305_v20  ;;  %v239_v25 = vmax.f32 %v187_v9, 1e-12  ;;  %v189_v28 = vmul.f32 %v1016_v24, %v1272_v40  ;;  %vm162_vm8 = vcmp.eq.f32.partialorder %v1305_v20, inf  ;;  %v1351_v48 = vpop.xlane.xlu1 %113 }
  0xac   :  { %1029 = vrcp.f32 %v232_v18  ;;  %v142_v8 = vsel %vm141_vm13, %v1269_v30, %v140_v19  ;;  %v200_v30 = vand.u32 2147483648, %v1286_v56  ;;  %vm164_vm9 = vcmp.eq.f32.partialorder %v1305_v20, 0.0 }
  0xad   :  { %v1018_v11 = vpop.eup %1017  ;;  %v145_v15 = vsel %vm143_vm14, %v144_v54, %v142_v8  ;;  %1031 = vrcp.f32 %v238_v14  ;;  %v191_v42 = vsel %vm190_vm2, %v1272_v40, %v189_v28  ;;  %vm211_vm14 = vcmp.eq.f32.partialorder %v1324_v29, inf }
  0xae   :  { %v1020_v32 = vpop.eup %1019  ;;  %v233_v34 = vmax.f32 %v145_v15, 1e-12  ;;  %v147_v35 = vmul.f32 %v1018_v11, %v1274_v45  ;;  %v1327_v36 = vpop.xlane.xlu0 %92  ;;  %1033 = vrsqrt.f32 %v1302_v16  ;;  %v194_v47 = vsel %vm192_vm3, %v193_v22, %v191_v42 }
  0xaf   :  { %v247_v27 = vmul.f32 %v1020_v32, %v1106_v0  ;;  %1035 = vrsqrt.f32 %v1327_v36  ;;  %v1022_v37 = vpop.eup %1021  ;;  %v240_v53 = vmax.f32 %v194_v47, 1e-12  ;;  %vm169_vm12 = vcmp.eq.f32.partialorder %v1327_v36, inf }
  0xb0   :  { %1037 = vrcp.f32 %v233_v34  ;;  %v149_v39 = vsel %vm148_vm15, %v1274_v45, %v147_v35  ;;  %v196_v54 = vmul.f32 %v1022_v37, %v1286_v56  ;;  %v165_v45 = vand.u32 2147483648, %v1305_v20 }
  0xb1   :  { %v1024_v43 = vpop.eup %1023  ;;  %278 = vst.msk [vmem:[%s1679_s3] sm:$0xff] %vm69_vm0, %v247_v27  ;;  %960 = vmatprep.mubr.msk.f32.mxu0 %vm69_vm0, %v247_v27  ;;  %v294_v0 = vmul.f32 %v247_v27, %v247_v27  ;;  %v152_v44 = vsel %vm150_vm1, %v151_v13, %v149_v39  ;;  %1039 = vrcp.f32 %v239_v25  ;;  %v172_v22 = vand.u32 2147483648, %v1327_v36 }
  0xb2   :  { %v1026_v50 = vpop.eup %1025  ;;  %v234_v51 = vmax.f32 %v152_v44, 1e-12  ;;  %v154_v52 = vmul.f32 %v1024_v43, %v1288_v61  ;;  %1041 = vrsqrt.f32 %v1324_v29  ;;  %v198_v60 = vsel %vm197_vm6, %v1286_v56, %v196_v54 }
  0xb3   :  { %v310_v57 = vsel %vm69_vm0, %v294_v0, 0.0  ;;  %v249_v58 = vmul.f32 %v1026_v50, %v1111_v1  ;;  %v201_v3 = vsel %vm199_vm7, %v200_v30, %v198_v60  ;;  %vm171_vm13 = vcmp.eq.f32.partialorder %v1327_v36, 0.0 }
  0xb4   :  { %311 = vadd.xlane.f32.xlu1 %v310_v57  ;;  %1043 = vrcp.f32 %v234_v51  ;;  %v156_v40 = vsel %vm155_vm4, %v1288_v61, %v154_v52  ;;  %v241_v13 = vmax.f32 %v201_v3, 1e-12  ;;  %v1381_v61 = vpop.xlane.xlu1 %116  ;;  %vm213_vm15 = vcmp.eq.f32.partialorder %v1324_v29, 0.0 }
  0xb5   :  { %v1028_v63 = vpop.eup %1027  ;;  %279 = vst.msk [vmem:[%s1679_s3 + $0x8] sm:$0xff] %vm69_vm0, %v249_v58  ;;  %961 = vmatmul.mubr.msk.f32.vlgmr.msra.gmra.mrb[0].mxu0 %vm69_vm0, %v249_v58  ;;  %v295_v1 = vmul.f32 %v249_v58, %v249_v58  ;;  %v159_v2 = vsel %vm157_vm5, %v158_v23, %v156_v40  ;;  %1045 = vrcp.f32 %v240_v53  ;;  %v207_v23 = vand.u32 2147483648, %v1302_v16 }
  0xb6   :  { %v1030_v6 = vpop.eup %1029  ;;  %v235_v10 = vmax.f32 %v159_v2, 1e-12  ;;  %v161_v12 = vmul.f32 %v1028_v63, %v1305_v20  ;;  %1047 = vrsqrt.f32 %v1351_v48  ;;  %v214_v42 = vand.u32 2147483648, %v1324_v29 }
  0xb7   :  { %v1032_v14 = vpop.eup %1031  ;;  %v313_v18 = vsel %vm69_vm0, %v295_v1, 0.0  ;;  %v251_v19 = vmul.f32 %v1030_v6, %v1120_v4  ;;  %vm218_vm1 = vcmp.eq.f32.partialorder %v1351_v48, inf  ;;  %v221_v54 = vand.u32 2147483648, %v1351_v48 }
  0xb8   :  { %v1034_v56 = vpop.eup %1033  ;;  %314 = vadd.xlane.f32.xlu1 %v313_v18  ;;  %1049 = vrcp.f32 %v235_v10  ;;  %v163_v21 = vsel %vm162_vm8, %v1305_v20, %v161_v12  ;;  %v1419_v0 = vmul.f32 %v1032_v14, %v1125_v5  ;;  %vm220_vm2 = vcmp.eq.f32.partialorder %v1351_v48, 0.0 }
  0xb9   :  { %v1036_v24 = vpop.eup %1035  ;;  %v166_v8 = vsel %vm164_vm9, %v165_v45, %v163_v21  ;;  %v296_v4 = vmul.f32 %v251_v19, %v251_v19  ;;  %280 = vst.msk [vmem:[%s1679_s3 + $0x10] sm:$0xff] %vm69_vm0, %v251_v19  ;;  %1051 = vrcp.f32 %v241_v13  ;;  %v203_v9 = vmul.f32 %v1034_v56, %v1302_v16  ;;  %963 = vmatprep.mubr.msk.f32.mxu0 %vm69_vm0, %v251_v19 }
  0xba   :  { %v1038_v11 = vpop.eup %1037  ;;  %v236_v15 = vmax.f32 %v166_v8, 1e-12  ;;  %v168_v25 = vmul.f32 %v1036_v24, %v1327_v36  ;;  %1053 = vrsqrt.f32 %v1381_v61  ;;  %286 = vst.msk [vmem:[%s1679_s3 + $0x40] sm:$0xff] %vm69_vm0, %v1419_v0  ;;  %972 = vmatprep.mubr.msk.f32.mxu1 %vm69_vm0, %v1419_v0  ;;  %vm225_vm3 = vcmp.eq.f32.partialorder %v1381_v61, inf }
  0xbb   :  { %v1040_v20 = vpop.eup %1039  ;;  %v316_v28 = vsel %vm69_vm0, %v296_v4, 0.0  ;;  %v253_v32 = vmul.f32 %v1038_v11, %v1165_v17  ;;  %v205_v34 = vsel %vm204_vm10, %v1302_v16, %v203_v9  ;;  %v228_v3 = vand.u32 2147483648, %v1381_v61 }
  0xbc   :  { %1055 = vrcp.f32 %v236_v15  ;;  %v170_v35 = vsel %vm169_vm12, %v1327_v36, %v168_v25  ;;  %317 = vadd.xlane.f32.xlu1 %v316_v28  ;;  %v208_v27 = vsel %vm206_vm11, %v207_v23, %v205_v34  ;;  %v1042_v30 = vpop.eup %1041  ;;  %v265_v44 = vmul.f32 %v1040_v20, %v1131_v7 }
  0xbd   :  { %v173_v37 = vsel %vm171_vm13, %v172_v22, %v170_v35  ;;  %v297_v17 = vmul.f32 %v253_v32, %v253_v32  ;;  %281 = vst.msk [vmem:[%s1679_s3 + $0x18] sm:$0xff] %vm69_vm0, %v253_v32  ;;  %v242_v39 = vmax.f32 %v208_v27, 1e-12  ;;  %964 = vmatmul.mubr.msk.f32.gmra.mrb[2].mxu0 %vm69_vm0, %v253_v32  ;;  %v210_v16 = vmul.f32 %v1042_v30, %v1324_v29 }
  0xbe   :  { %v1044_v36 = vpop.eup %1043  ;;  %v237_v43 = vmax.f32 %v173_v37, 1e-12  ;;  %287 = vst.msk [vmem:[%s1679_s3 + $0x48] sm:$0xff] %vm69_vm0, %v265_v44  ;;  %v303_v5 = vmul.f32 %v265_v44, %v265_v44  ;;  %973 = vmatmul.mubr.msk.f32.vlgmr.msra.gmra.mrb[0].mxu1 %vm69_vm0, %v265_v44  ;;  %vm227_vm4 = vcmp.eq.f32.partialorder %v1381_v61, 0.0  ;;  %vm358_vm5 = vcmask 7168  }
  0xbf   :  { %v1046_v47 = vpop.eup %1045  ;;  %v319_v50 = vsel %vm69_vm0, %v297_v17, 0.0  ;;  %1057 = vrcp.f32 %v242_v39  ;;  %v255_v51 = vmul.f32 %v1044_v36, %v1181_v26  ;;  %v212_v52 = vsel %vm211_vm14, %v1324_v29, %v210_v16  ;;  %v647_v17 = vpop.permute.xlu0 %646 }
  0xc0   :  { %1059 = vrcp.f32 %v237_v43  ;;  %320 = vadd.xlane.f32.xlu1 %v319_v50  ;;  %v1048_v7 = vpop.eup %1047  ;;  %v215_v53 = vsel %vm213_vm15, %v214_v42, %v212_v52  ;;  %v267_v57 = vmul.f32 %v1046_v47, %v1194_v33  ;;  %v337_v60 = vsel %vm69_vm0, %v303_v5, 0.0 }
  0xc1   :  { %v298_v26 = vmul.f32 %v255_v51, %v255_v51  ;;  %282 = vst.msk [vmem:[%s1679_s3 + $0x20] sm:$0xff] %vm69_vm0, %v255_v51  ;;  %966 = vmatprep.mubr.msk.f32.mxu0 %vm69_vm0, %v255_v51  ;;  %v243_v45 = vmax.f32 %v215_v53, 1e-12  ;;  %v217_v40 = vmul.f32 %v1048_v7, %v1351_v48  ;;  %338 = vadd.xlane.f32.xlu0 %v337_v60 }
  0xc2   :  { %v1050_v58 = vpop.eup %1049  ;;  %288 = vst.msk [vmem:[%s1679_s3 + $0x50] sm:$0xff] %vm69_vm0, %v267_v57  ;;  %975 = vmatprep.mubr.msk.f32.mxu1 %vm69_vm0, %v267_v57  ;;  %v304_v15 = vmul.f32 %v267_v57, %v267_v57 }
  0xc3   :  { %v1052_v63 = vpop.eup %1051  ;;  %v322_v29 = vsel %vm69_vm0, %v298_v26, 0.0  ;;  %v257_v1 = vmul.f32 %v1050_v58, %v1189_v31  ;;  %1061 = vrcp.f32 %v243_v45  ;;  %v219_v2 = vsel %vm218_vm1, %v1351_v48, %v217_v40 }
  0xc4   :  { %v1054_v33 = vpop.eup %1053  ;;  %323 = vadd.xlane.f32.xlu1 %v322_v29  ;;  %v269_v31 = vmul.f32 %v1052_v63, %v1210_v41  ;;  %v222_v10 = vsel %vm220_vm2, %v221_v54, %v219_v2  ;;  %v340_v28 = vsel %vm69_vm0, %v304_v15, 0.0  ;;  %v594_v26 = vlaneseq }
  0xc5   :  { %v299_v6 = vmul.f32 %v257_v1, %v257_v1  ;;  %283 = vst.msk [vmem:[%s1679_s3 + $0x28] sm:$0xff] %vm69_vm0, %v257_v1  ;;  %v224_v12 = vmul.f32 %v1054_v33, %v1381_v61  ;;  %967 = vmatmul.mubr.msk.f32.gmra.mrb[4].mxu0 %vm69_vm0, %v257_v1  ;;  %v244_v14 = vmax.f32 %v222_v10, 1e-12 }
  0xc6   :  { %v1056_v13 = vpop.eup %1055  ;;  %289 = vst.msk [vmem:[%s1679_s3 + $0x58] sm:$0xff] %vm69_vm0, %v269_v31  ;;  %976 = vmatmul.mubr.msk.f32.gmra.mrb[2].mxu1 %vm69_vm0, %v269_v31  ;;  %v305_v32 = vmul.f32 %v269_v31, %v269_v31  ;;  %v595_v53 = vand.u32 127, %v594_v26 }
  0xc7   :  { %v325_v41 = vsel %vm69_vm0, %v299_v6, 0.0  ;;  %v259_v48 = vmul.f32 %v1056_v13, %v1204_v38  ;;  %v226_v18 = vsel %vm225_vm3, %v1381_v61, %v224_v12  ;;  %1063 = vrcp.f32 %v244_v14 }
  0xc8   :  { %326 = vadd.xlane.f32.xlu1 %v325_v41  ;;  %v229_v19 = vsel %vm227_vm4, %v228_v3, %v226_v18  ;;  %vm596_vm6 = vcmp.lt.s32.totalorder %v595_v53, 8  ;;  %vm693_vm7 = vcmp.eq.s32.totalorder %v595_v53, %v647_v17 }
  0xc9   :  { %v1058_v56 = vpop.eup %1057  ;;  %v300_v21 = vmul.f32 %v259_v48, %v259_v48  ;;  %284 = vst.msk [vmem:[%s1679_s3 + $0x30] sm:$0xff] %vm69_vm0, %v259_v48  ;;  %v245_v22 = vmax.f32 %v229_v19, 1e-12  ;;  %969 = vmatprep.mubr.msk.f32.mxu0 %vm69_vm0, %v259_v48 }
  0xca   :  { %v1060_v23 = vpop.eup %1059  ;;  %v271_v38 = vmul.f32 %v1058_v56, %v1226_v49  ;;  %v302_v49 = vmul.f32 %v1419_v0, %v1419_v0 }
  0xcb   :  { %v328_v24 = vsel %vm69_vm0, %v300_v21, 0.0  ;;  %1065 = vrcp.f32 %v245_v22  ;;  %v261_v61 = vmul.f32 %v1060_v23, %v1220_v46  ;;  %v1072_v21 = vmov 0.0  }
  0xcc   :  { %329 = vadd.xlane.f32.xlu1 %v328_v24  ;;  %290 = vst.msk [vmem:[%s1679_s3 + $0x60] sm:$0xff] %vm69_vm0, %v271_v38  ;;  %978 = vmatprep.mubr.msk.f32.mxu1 %vm69_vm0, %v271_v38  ;;  %v334_v11 = vsel %vm69_vm0, %v302_v49, 0.0  ;;  %v306_v35 = vmul.f32 %v271_v38, %v271_v38 }
  0xcd   :  { %v301_v8 = vmul.f32 %v261_v61, %v261_v61  ;;  %285 = vst.msk [vmem:[%s1679_s3 + $0x38] sm:$0xff] %vm69_vm0, %v261_v61  ;;  %970 = vmatmul.mubr.msk.f32.gmra.mrb[6].mxu0 %vm69_vm0, %v261_v61  ;;  %v1062_v46 = vpop.eup %1061 }
  0xce   :  { %v1506_v9 = vmul.f32 %v1062_v46, %v1237_v55  ;;  %v346_v27 = vsel %vm69_vm0, %v306_v35, 0.0  ;;  %889 = vst.msk [vmem:[%s1681_s5 + $0x8] sm:$0xff] %vm358_vm5, %v1072_v21  ;;  %890 = vst.msk [vmem:[%s1681_s5 + $0x10] sm:$0xff] %vm358_vm5, %v1072_v21 }
  0xcf   :  { %v331_v4 = vsel %vm69_vm0, %v301_v8, 0.0  ;;  %891 = vst.msk [vmem:[%s1681_s5 + $0x18] sm:$0xff] %vm358_vm5, %v1072_v21  ;;  %892 = vst.msk [vmem:[%s1681_s5 + $0x20] sm:$0xff] %vm358_vm5, %v1072_v21 }
  0xd0   :  { %332 = vadd.xlane.f32.xlu1 %v331_v4  ;;  %291 = vst.msk [vmem:[%s1679_s3 + $0x68] sm:$0xff] %vm69_vm0, %v1506_v9  ;;  %979 = vmatmul.mubr.msk.f32.gmra.mrb[4].mxu1 %vm69_vm0, %v1506_v9  ;;  %v307_v63 = vmul.f32 %v1506_v9, %v1506_v9 }
  0xd1   :  { %v1064_v25 = vpop.eup %1063  ;;  %893 = vst.msk [vmem:[%s1681_s5 + $0x28] sm:$0xff] %vm358_vm5, %v1072_v21  ;;  %894 = vst.msk [vmem:[%s1681_s5 + $0x30] sm:$0xff] %vm358_vm5, %v1072_v21 }
  0xd2   :  { %v1517_v20 = vmul.f32 %v1064_v25, %v1246_v59  ;;  %v343_v59 = vsel %vm69_vm0, %v305_v32, 0.0  ;;  %v349_v31 = vsel %vm69_vm0, %v307_v63, 0.0  ;;  %895 = vst.msk [vmem:[%s1681_s5 + $0x38] sm:$0xff] %vm358_vm5, %v1072_v21  ;;  %896 = vst.msk [vmem:[%s1681_s5 + $0x40] sm:$0xff] %vm358_vm5, %v1072_v21 }
  0xd3   :  { %897 = vst.msk [vmem:[%s1681_s5 + $0x48] sm:$0xff] %vm358_vm5, %v1072_v21  ;;  %898 = vst.msk [vmem:[%s1681_s5 + $0x50] sm:$0xff] %vm358_vm5, %v1072_v21 }
  0xd4   :  { %335 = vadd.xlane.f32.xlu1 %v334_v11  ;;  %292 = vst.msk [vmem:[%s1679_s3 + $0x70] sm:$0xff] %vm69_vm0, %v1517_v20  ;;  %981 = vmatprep.mubr.msk.f32.mxu1 %vm69_vm0, %v1517_v20  ;;  %v308_v6 = vmul.f32 %v1517_v20, %v1517_v20 }
  0xd5   :  { %v1066_v55 = vpop.eup %1065  ;;  %899 = vst.msk [vmem:[%s1681_s5 + $0x58] sm:$0xff] %vm358_vm5, %v1072_v21  ;;  %900 = vst.msk [vmem:[%s1681_s5 + $0x60] sm:$0xff] %vm358_vm5, %v1072_v21 }
  0xd6   :  { %v1528_v34 = vmul.f32 %v1066_v55, %v1254_v62  ;;  %v352_v10 = vsel %vm69_vm0, %v308_v6, 0.0  ;;  %901 = vst.msk [vmem:[%s1681_s5 + $0x68] sm:$0xff] %vm358_vm5, %v1072_v21  ;;  %902 = vst.msk [vmem:[%s1681_s5 + $0x70] sm:$0xff] %vm358_vm5, %v1072_v21 }
  0xd7   :  { %903 = vst.msk [vmem:[%s1681_s5 + $0x78] sm:$0xff] %vm358_vm5, %v1072_v21 }
  0xd8   :  { %341 = vadd.xlane.f32.xlu1 %v340_v28  ;;  %293 = vst.msk [vmem:[%s1679_s3 + $0x78] sm:$0xff] %vm69_vm0, %v1528_v34  ;;  %982 = vmatmul.mubr.msk.f32.gmra.mrb[6].mxu1 %vm69_vm0, %v1528_v34  ;;  %v309_v14 = vmul.f32 %v1528_v34, %v1528_v34 }
  0xda   :  { %v355_v18 = vsel %vm69_vm0, %v309_v14, 0.0 }
  0xdc   :  { %344 = vadd.xlane.f32.xlu1 %v343_v59 }
  0xe0   :  { %347 = vadd.xlane.f32.xlu1 %v346_v27 }
 0x141   :  { %v312_v62 = vpop.xlane.xlu1 %311 }
 0x142   :  { %359 = vst.msk [vmem:[%s1680_s4] sm:$0xff] %vm358_vm5, %v312_v62 }
 0x145   :  { %v315_v30 = vpop.xlane.xlu1 %314 }
 0x146   :  { %360 = vst.msk [vmem:[%s1680_s4 + $0x8] sm:$0xff] %vm358_vm5, %v315_v30 }
 0x149   :  { %v318_v37 = vpop.xlane.xlu1 %317 }
 0x14a   :  { %361 = vst.msk [vmem:[%s1680_s4 + $0x10] sm:$0xff] %vm358_vm5, %v318_v37 }
 0x14d   :  { %v321_v39 = vpop.xlane.xlu1 %320 }
 0x14e   :  { %362 = vst.msk [vmem:[%s1680_s4 + $0x18] sm:$0xff] %vm358_vm5, %v321_v39  ;;  %v339_v42 = vpop.xlane.xlu0 %338 }
 0x14f   :  { %368 = vst.msk [vmem:[%s1680_s4 + $0x48] sm:$0xff] %vm358_vm5, %v339_v42 }
 0x151   :  { %v324_v36 = vpop.xlane.xlu1 %323 }
 0x152   :  { %363 = vst.msk [vmem:[%s1680_s4 + $0x20] sm:$0xff] %vm358_vm5, %v324_v36 }
 0x155   :  { %v327_v43 = vpop.xlane.xlu1 %326 }
 0x156   :  { %364 = vst.msk [vmem:[%s1680_s4 + $0x28] sm:$0xff] %vm358_vm5, %v327_v43 }
 0x159   :  { %v330_v16 = vpop.xlane.xlu1 %329 }
 0x15a   :  { %365 = vst.msk [vmem:[%s1680_s4 + $0x30] sm:$0xff] %vm358_vm5, %v330_v16 }
 0x15d   :  { %v333_v0 = vpop.xlane.xlu1 %332 }
 0x15e   :  { %366 = vst.msk [vmem:[%s1680_s4 + $0x38] sm:$0xff] %vm358_vm5, %v333_v0 }
 0x161   :  { %v336_v44 = vpop.xlane.xlu1 %335 }
 0x162   :  { %367 = vst.msk [vmem:[%s1680_s4 + $0x40] sm:$0xff] %vm358_vm5, %v336_v44 }
 0x165   :  { %v342_v47 = vpop.xlane.xlu1 %341 }
 0x166   :  { %369 = vst.msk [vmem:[%s1680_s4 + $0x50] sm:$0xff] %vm358_vm5, %v342_v47 }
 0x169   :  { %v345_v50 = vpop.xlane.xlu1 %344 }
 0x16a   :  { %370 = vst.msk [vmem:[%s1680_s4 + $0x58] sm:$0xff] %vm358_vm5, %v345_v50 }
 0x16d   :  { %v348_v51 = vpop.xlane.xlu1 %347 }
 0x16e   :  { %371 = vst.msk [vmem:[%s1680_s4 + $0x60] sm:$0xff] %vm358_vm5, %v348_v51 }
 0x188   :  { %v962_v52 = vpop.f32.mrb[0].mxu0 }
 0x189   :  { %v515_v5 = vpop.f32.mrb[1].mxu0 }
 0x18a   :  { %v597_v7 = vmul.f32 1.442695, %v515_v5 }
 0x18c   :  { %1067 = vpow2.f32 %v597_v7 }
 0x190   :  { %v965_v54 = vpop.f32.mrb[2].mxu0 }
 0x191   :  { %v525_v57 = vpop.f32.mrb[3].mxu0  ;;  %v974_v58 = vpop.f32.mrb[0].mxu1 }
 0x192   :  { %v555_v45 = vpop.f32.mrb[1].mxu1 }
 0x196   :  { %v1068_v40 = vpop.eup %1067 }
 0x197   :  { %v629_v60 = vsel %vm596_vm6, %v1068_v40, 0.0 }
 0x198   :  { %757 = vadd.xlane.f32.xlu1 %v629_v60  ;;  %v709_v29 = vsel %vm693_vm7, %v629_v60, 0.0  ;;  %v968_v1 = vpop.f32.mrb[4].mxu0 }
 0x199   :  { %v977_v33 = vpop.f32.mrb[2].mxu1  ;;  %v535_v2 = vpop.f32.mrb[5].mxu0 }
 0x19a   :  { %v565_v3 = vpop.f32.mrb[3].mxu1 }
 0x19c   :  { %350 = vadd.xlane.f32.xlu1 %v349_v31 }
 0x1a0   :  { %353 = vadd.xlane.f32.xlu1 %v352_v10  ;;  %v971_v12 = vpop.f32.mrb[6].mxu0 }
 0x1a1   :  { %v545_v13 = vpop.f32.mrb[7].mxu0 }
 0x1a3   :  { %v980_v41 = vpop.f32.mrb[4].mxu1 }
 0x1a4   :  { %725 = vadd.xlane.f32.xlu1 %v709_v29  ;;  %v575_v48 = vpop.f32.mrb[5].mxu1 }
 0x1a8   :  { %356 = vadd.xlane.f32.xlu1 %v355_v18 }
 0x1ab   :  { %v983_v19 = vpop.f32.mrb[6].mxu1 }
 0x1ac   :  { %v585_v56 = vpop.f32.mrb[7].mxu1 }
 0x225   :  { %v758_v22 = vpop.xlane.xlu1 %757 }
 0x226   :  { %1069 = vrcp.f32 %v758_v22 }
 0x229   :  { %v351_v23 = vpop.xlane.xlu1 %350 }
 0x22a   :  { %372 = vst.msk [vmem:[%s1680_s4 + $0x68] sm:$0xff] %vm358_vm5, %v351_v23 }
 0x22d   :  { %v354_v38 = vpop.xlane.xlu1 %353 }
 0x22e   :  { %373 = vst.msk [vmem:[%s1680_s4 + $0x70] sm:$0xff] %vm358_vm5, %v354_v38 }
 0x230   :  { %v1070_v24 = vpop.eup %1069 }
 0x231   :  { %v726_v61 = vpop.xlane.xlu1 %725 }
 0x232   :  { %v790_v8 = vmul.f32 %v1070_v24, %v726_v61 }
 0x234   :  { %888 = vst.msk [vmem:[%s1681_s5] sm:$0xff] %vm358_vm5, %v790_v8 }
 0x235   :  { %v357_v49 = vpop.xlane.xlu1 %356 }
 0x236   :  { %374 = vst.msk [vmem:[%s1680_s4 + $0x78] sm:$0xff] %vm358_vm5, %v357_v49 }

</bundles_post_ra>
